<compile_context>
chip_gen: v6e
topology: v6e:2x2x1
jax: 0.10.0
libtpu: 0.0.40
codegen_flags: <defaults>
</compile_context>

<pallas_src>
import jax
import jax.numpy as jnp
from jax import lax
from jax.experimental import pallas as pl
from jax.experimental.pallas import tpu as pltpu


def _patch_embed_kernel(x_ref, w_ref, b_ref, o_ref):
    # x_ref: (C, tp) f32/bf16   w_ref: (C, E) bf16   b_ref: (1, E) f32
    # o_ref: (tp, E)
    x = x_ref[...].astype(jnp.bfloat16)          # bf16 MXU datapath
    acc = lax.dot_general(
        x, w_ref[...],
        dimension_numbers=(((0,), (0,)), ((), ())),   # contract over C
        preferred_element_type=jnp.float32)           # f32 accumulate
    o_ref[...] = (acc + b_ref[...]).astype(o_ref.dtype)


def _pick_tile(hw, cap, min_steps):
    """Largest multiple-of-128 divisor of hw that is <= cap and leaves at
    least `min_steps` grid steps; fall back to the full extent."""
    best = None
    t = 128
    while t <= min(hw, cap):
        if hw % t == 0 and hw // t >= min_steps:
            best = t
        t += 128
    return best if best is not None else hw


def patch_embed(x, weight, bias, *, tp_cap=1024):
    """x: (B, C, H, W); weight: (E, C); bias: (E,).  Returns (B, H*W, E).

    Matches nn.Linear(dim_in=C, embed_dim=E) applied after
    rearrange('b c h w -> b (h w) c'); norm is Identity (no-op).
    """
    B, C, H, W = x.shape
    E = weight.shape[0]
    HW = H * W

    # Free, contiguous reshape -- no transpose, no extra HBM traffic.
    x3d = x.reshape(B, C, HW)
    wt = weight.T.astype(jnp.bfloat16)          # (C, E), tiny, resident
    b2d = bias.reshape(1, E).astype(jnp.float32)

    # Keep >= 2 parallel grid steps when B == 1 so v7x's 2 TCs both work.
    tp = _pick_tile(HW, tp_cap, min_steps=1 if B >= 2 else 2)
    grid = (B, HW // tp)

    out = pl.pallas_call(
        _patch_embed_kernel,
        out_shape=jax.ShapeDtypeStruct((B, HW, E), x.dtype),
        grid_spec=pltpu.PrefetchScalarGridSpec(
            num_scalar_prefetch=0,
            grid=grid,
            in_specs=[
                # activation tile: full C on sublanes, tp (x128) on lanes
                pl.BlockSpec((None, C, tp), lambda b, p: (b, 0, p)),
                # weight: fully resident across the grid
                pl.BlockSpec((C, E), lambda b, p: (0, 0)),
                # bias: fully resident
                pl.BlockSpec((1, E), lambda b, p: (0, 0)),
            ],
            out_specs=pl.BlockSpec((None, tp, E), lambda b, p: (b, p, 0)),
        ),
        compiler_params=pltpu.CompilerParams(
            dimension_semantics=("parallel", "parallel")),
    )(x3d, wt, b2d)
    return out


if __name__ == "__main__":
    # Small, deterministic synthetic config (norm_layer=None -> Identity).
    B, C, H, W = 2, 32, 16, 16    # dim_in = C = 32, H*W = 256 patches
    E = 128                       # embed_dim (multiple of 128 -> lane-dense out)

    key = jax.random.PRNGKey(0)
    kx, kw, kb = jax.random.split(key, 3)
    x = jax.random.normal(kx, (B, C, H, W), dtype=jnp.float32)
    bound = 1.0 / (C ** 0.5)
    weight = jax.random.uniform(kw, (E, C), jnp.float32, -bound, bound)
    bias = jax.random.uniform(kb, (E,), jnp.float32, -bound, bound)

    out = patch_embed(x, weight, bias)
    out = jax.block_until_ready(out)
    assert out.shape == (B, H * W, E)

    # Reference with the same bf16 input rounding (matmul accumulates in f32).
    xb = x.astype(jnp.bfloat16).astype(jnp.float32)
    wb = weight.astype(jnp.bfloat16).astype(jnp.float32)
    ref_bf16 = jnp.einsum(
        "bpc,ec->bpe",
        jnp.transpose(xb, (0, 2, 3, 1)).reshape(B, H * W, C), wb) + bias
    assert jnp.allclose(out, ref_bf16, atol=1e-3, rtol=1e-3)

    # Loose sanity check against the pure-f32 reference (bf16 input rounding).
    ref_f32 = jnp.einsum(
        "bpc,ec->bpe",
        jnp.transpose(x, (0, 2, 3, 1)).reshape(B, H * W, C), weight) + bias
    assert jnp.allclose(out, ref_f32, atol=5e-2, rtol=5e-2)

    print("KERNEL_OK")
</pallas_src>

<mosaic_0001>
module attributes {stable_mosaic.version = 11 : i64} {
  func.func @_patch_embed_kernel(%arg0: i32, %arg1: i32, %arg2: memref<1x32x256xf32, #tpu.memory_space<vmem>>, %arg3: memref<32x128xbf16, #tpu.memory_space<vmem>>, %arg4: memref<1x128xf32, #tpu.memory_space<vmem>>, %arg5: memref<1x256x128xf32, #tpu.memory_space<vmem>>) attributes {dimension_semantics = [#tpu.dimension_semantics<parallel>, #tpu.dimension_semantics<parallel>], iteration_bounds = array<i64: 2, 1>, scalar_prefetch = 0 : i64, scratch_operands = 0 : i64, tpu.core_type = #tpu.core_type<tc>, window_params = [{transform_indices = @transform_0, window_bounds = array<i64: 1, 32, 256>}, {pipeline_mode = #tpu.pipeline_mode<synchronous>, transform_indices = @transform_1, window_bounds = array<i64: 32, 128>}, {pipeline_mode = #tpu.pipeline_mode<synchronous>, transform_indices = @transform_2, window_bounds = array<i64: 1, 128>}, {transform_indices = @transform_3, window_bounds = array<i64: 1, 256, 128>}]} {
    %c0 = arith.constant 0 : index
    %c0_0 = arith.constant 0 : index
    %c0_1 = arith.constant 0 : index
    %0 = vector.load %arg2[%c0, %c0_0, %c0_1] : memref<1x32x256xf32, #tpu.memory_space<vmem>>, vector<1x32x256xf32>
    %1 = vector.shape_cast %0 : vector<1x32x256xf32> to vector<32x256xf32>
    %2 = arith.truncf %1 : vector<32x256xf32> to vector<32x256xbf16>
    %c0_2 = arith.constant 0 : index
    %c0_3 = arith.constant 0 : index
    %3 = vector.load %arg3[%c0_2, %c0_3] : memref<32x128xbf16, #tpu.memory_space<vmem>>, vector<32x128xbf16>
    %cst = arith.constant dense<0.000000e+00> : vector<256x128xf32>
    %4 = tpu.matmul %2, %3, %cst {dimension_numbers = #tpu.dot_dimension_numbers<[0], [0], [1], [1], [0, 1, 1, 1], [], []>} : vector<32x256xbf16>, vector<32x128xbf16>, vector<256x128xf32> -> vector<256x128xf32>
    %c0_4 = arith.constant 0 : index
    %c0_5 = arith.constant 0 : index
    %5 = vector.load %arg4[%c0_4, %c0_5] : memref<1x128xf32, #tpu.memory_space<vmem>>, vector<1x128xf32>
    %6 = vector.broadcast %5 : vector<1x128xf32> to vector<256x128xf32>
    %7 = arith.addf %4, %6 : vector<256x128xf32>
    %c0_6 = arith.constant 0 : index
    %c0_7 = arith.constant 0 : index
    %c0_8 = arith.constant 0 : index
    %8 = vector.load %arg5[%c0_6, %c0_7, %c0_8] : memref<1x256x128xf32, #tpu.memory_space<vmem>>, vector<1x256x128xf32>
    %9 = vector.shape_cast %8 : vector<1x256x128xf32> to vector<256x128xf32>
    %10 = vector.shape_cast %7 : vector<256x128xf32> to vector<1x256x128xf32>
    tpu.vector_store %arg5[%c0_6, %c0_7, %c0_8], %10 {strides = array<i32>} : memref<1x256x128xf32, #tpu.memory_space<vmem>>, vector<1x256x128xf32>,
    return
  }
  func.func @transform_0(%arg0: i32, %arg1: i32) -> (i32, i32, i32) {
    %c0_i32 = arith.constant 0 : i32
    %c0_i32_0 = arith.constant 0 : i32
    return %arg0, %c0_i32, %arg1 : i32, i32, i32
  }
  func.func @transform_1(%arg0: i32, %arg1: i32) -> (i32, i32) {
    %c0_i32 = arith.constant 0 : i32
    %c0_i32_0 = arith.constant 0 : i32
    %c0_i32_1 = arith.constant 0 : i32
    return %c0_i32, %c0_i32_0 : i32, i32
  }
  func.func @transform_2(%arg0: i32, %arg1: i32) -> (i32, i32) {
    %c0_i32 = arith.constant 0 : i32
    %c0_i32_0 = arith.constant 0 : i32
    %c0_i32_1 = arith.constant 0 : i32
    return %c0_i32, %c0_i32_0 : i32, i32
  }
  func.func @transform_3(%arg0: i32, %arg1: i32) -> (i32, i32, i32) {
    %c0_i32 = arith.constant 0 : i32
    %c0_i32_0 = arith.constant 0 : i32
    return %arg0, %arg1, %c0_i32 : i32, i32, i32
  }
}

</mosaic_0001>

<bundles_post_ra>
// kernel: tpu_custom_call.1
= control target key start
LH: loop header
LB: loop body
LE: loop exit
PB: predicated region body
PF: predicated region fallthrough
CT: control target
= control target key end

     0   :  { %8 = vsyncpa [#allocation3], 0  ;;  %s1264_s0 = inlined_call_operand.hbm [shape: f32[2,32,256], index: 0, kind: input, shape index: {}]   ;;  %s1265_s1 = inlined_call_operand.hbm [shape: bf16[32,128], index: 1, kind: input, shape index: {}]   ;;  %s1266_s2 = inlined_call_operand.vmem [shape: f32[1,128], index: 2, kind: input, shape index: {}]   ;;  %s1267_s3 = inlined_call_operand.hbm [shape: f32[2,256,128], index: 3, kind: output, shape index: {}]  }
   0x1   :  { %10 = vsyncpa [#allocation3 + $0x1], 0 }
   0x2   :  { %11 = vsyncpa [#allocation6], 0 }
   0x3   :  { %12 = vsyncpa [#allocation4], 0 }
   0x4   :  { %14 = vsyncpa [#allocation4 + $0x1], 0  ;;  %s994_s12 = smov 0   ;;  %s996_s13 = smov 0  }
   0x5   :  { %s998_s14 = smov 0   ;;  %s1000_s15 = smov 0  }
   0x6   :  { %s1002_s16 = smov 0   ;;  %s1004_s17 = smov 0  }
   0x7 LB: > { %s647_s18 = sadd.s32 4294967295, %s963_s17   ;;  %s648_s19 = sadd.s32 4294967294, %s963_s17   ;;  %s963_s17 = sphi %s1004_s17, %s20_s17   ;;  %s959_s16 = sphi %s1002_s16, %s1285_s16   ;;  %s955_s15 = sphi %s1000_s15, %s1284_s15   ;;  %s951_s14 = sphi %s998_s14, %s1283_s14   ;;  %s947_s13 = sphi %s996_s13, %s1282_s13   ;;  %s943_s12 = sphi %s994_s12, %s1281_s12  }
   0x8   : > { %p54_p0 = scmp.ne.s32.totalorder %s947_s13, %s943_s12  ;;  %p1028_p1 = scmp.eq.s32.totalorder %s647_s18, 0 }
   0x9   : > { %p1032_p2 = scmp.eq.s32.totalorder %s647_s18, 1  ;;  %p128_p3 = scmp.eq.s32.totalorder %s648_s19, 1 }
   0xa   : > { %p1038_p4 = por %p1028_p1, %p54_p0  ;;  %p649_p5 = scmp.ge.s32.totalorder %s963_s17, 1 }
   0xb   : > { %p1043_p6 = por %p128_p3, %p54_p0  ;;  %p135_p7 = scmp.lt.s32.totalorder %s963_s17, 3 }
   0xc   : > { %s1271_s22 = scalar_select %p1038_p4, 1, 0 }
   0xd   : > { %s1272_s23 = scalar_select %p1043_p6, 1, 0 }
   0xe   : > { %p1048_p8 = pnand %p649_p5, %p135_p7  ;;  %s965_s25 = smov [#allocation5]  }
   0xf   : > { %s147_s26 = sshll.u32 %s965_s25, 4  ;;  %s32_s28 = sadd.s32 1, %s959_s16  ;;  %s148_s26 = int_to_ptr.vmem [resolvable:$true] %s147_s26 }
  0x10   : > { %p751_p9 = pneg %p1048_p8  ;;  %s836_s29 = scalar_lea.vmem %s148_s26, 256 }
  0x11   : > { %p837_p13 = scmp.ne.s32.totalorder %s148_s26, %s836_s29  ;;  %p844_p5 = scmp.lt.s32.totalorder %s148_s26, %s148_s26 }
  0x12   : > { %p1057_p11 = pnand %p751_p9, %p1028_p1  ;;  %p845_p7 = scmp.lt.s32.totalorder %s836_s29, %s836_s29 }
  0x14   : > { %p827_p12 = pneg %p1057_p11  ;;  %p846_p6 = por %p845_p7, %p844_p5 }
  0x16   : > { %p839_p0 = pnand %p837_p13, %p827_p12 }
  0x18   : > { %p840_p3 = pneg %p839_p0 }
  0x1a   : > { %p847_p4 = pnand %p846_p6, %p840_p3 }
  0x1c   : > { %850 = shalt.err (!%p847_p4)
}
  0x1d   : > { %s966_s30 = smov 64   ;;  %s967_s4 = smov 4  }
  0x1e   : > { %754 = dma.hbm_to_vmem [thread:$0]  (!%p1057_p11), %s1265_s1, 256, %s148_s26, [#allocation6], %s966_s30, %s966_s30, %s967_s4  }
  0x1f   : > { %p34_p6 = scmp.ge.s32.totalorder %s32_s28, 2  ;;  %s41_s7 = sadd.s32 1, %s951_s14 }
  0x20   : > { %p48_p4 = scmp.ne.s32.totalorder %s951_s14, %s947_s13  ;;  %p49_p9 = scmp.eq.s32.totalorder %s963_s17, 0 }
  0x21   : > { %s1287_s28 = smov (%p34_p6, %s32_s28), 0  ;;  %p764_p0 = scmp.lt.s32.totalorder %s963_s17, 2 }
  0x22   : > { %p1075_p12 = por %p49_p9, %p48_p4  ;;  %p1081_p13 = por %p1032_p2, %p48_p4 }
  0x23   : > { %s36_s10 = ssub.s32 %s959_s16, %s1287_s28  ;;  %s164_s11 = sand.u32 1, %s951_s14  }
  0x24   : > { %p39_p11 = scmp.eq.s32.totalorder %s36_s10, 0  ;;  %s652_s18 = sshll.u32 %s164_s11, 6 }
  0x25   : > { %s683_s25 = sshll.u32 %s959_s16, 10  ;;  %s168_s30 = scalar_lea.vmem [#allocation2], %s652_s18 }
  0x26   : > { %s1090_s19 = scalar_select %p39_p11, %s951_s14, %s41_s7  }
  0x27   : > { %s176_s29 = scalar_lea.hbm %s1264_s0, %s683_s25  ;;  %s177_s4 = sshll.u32 %s168_s30, 4  ;;  %s178_s4 = int_to_ptr.vmem [resolvable:$true] %s177_s4 }
  0x28   : > { %p1098_p2 = pnand %p764_p0, %p1075_p12  ;;  %s165_s5 = scalar_lea.sflag [#allocation3], %s164_s11 }
  0x29   : > { %s864_s6 = scalar_lea.vmem %s178_s4, 1024  ;;  %s968_s7 = smov [#allocation2]  }
  0x2a   : > { %p853_p3 = pneg %p1098_p2  ;;  %p865_p5 = scmp.ne.s32.totalorder %s178_s4, %s864_s6 }
  0x2b   : > { %s869_s10 = sshll.u32 %s968_s7, 4  ;;  %s870_s10 = int_to_ptr.vmem [resolvable:$false] %s869_s10 }
  0x2c   : > { %p867_p7 = pnand %p865_p5, %p853_p3  ;;  %s871_s25 = scalar_lea.vmem %s870_s10, 2048 }
  0x2d   : > { %p872_p4 = scmp.lt.s32.totalorder %s178_s4, %s870_s10  ;;  %p873_p9 = scmp.lt.s32.totalorder %s871_s25, %s864_s6 }
  0x2e   : > { %p868_p6 = pneg %p867_p7 }
  0x2f   : > { %p874_p11 = por %p873_p9, %p872_p4 }
  0x31   : > { %p875_p10 = pnand %p874_p11, %p868_p6 }
  0x33   : > { %878 = shalt.err (!%p875_p10)
}
  0x34   : > { %s969_s8 = smov 256   ;;  %s970_s18 = smov 16  }
  0x35   : > { %758 = dma.hbm_to_vmem [thread:$0]  (!%p1098_p2), %s176_s29, 1024, %s178_s4, %s165_s5, %s969_s8, %s969_s8, %s970_s18  }
  0x36   : > { %189 = sbr.rel (%p1048_p8) target bundleno = 408 (0x198), region = 32  ;;  %s1109_s11 = sand.u32 (!%p1048_p8), 1, %s947_s13  }
  0x37   : > { %s656_s26 = sshll.u32 (!%p1048_p8), %s1109_s11, 6  ;;  %s192_s27 = scalar_lea.sflag (!%p1048_p8), [#allocation3], %s1109_s11 }
  0x38   : > { %s195_s30 = scalar_lea.vmem (!%p1048_p8), [#allocation2], %s656_s26  ;;  %p1278_p12 = scmp.ne.s32.totalorder (!%p1048_p8), %s1271_s22, 0 }
  0x3b   : > { %930 = dma.done.wait (%p1278_p12), %s192_s27, 1024  }
  0x3c   : > { %932 = vsyncadd (%p1278_p12), %s192_s27, 4294966272 }
  0x3d   : > { %934 = dma.done.wait (%p1028_p1), [#allocation6], 256  }
  0x3e   : > { %936 = vsyncadd (%p1028_p1), [#allocation6], 4294967040  ;;  %v226_v0 = vld [vmem:[%s195_s30 + $0x8] sm:$0xff]  ;;  %v228_v1 = vld [vmem:[%s195_s30 + $0x18] sm:$0xff]  ;;  %vm292_vm0 = vcmask 261120   ;;  %s658_s20 = sshll.u32 %s1109_s11, 8 }
  0x3f   : > { %v225_v2 = vld [vmem:[%s195_s30] sm:$0xff]  ;;  %v234_v3 = vpack.c.bf16 %v228_v1, %v226_v0  ;;  %v227_v4 = vld [vmem:[%s195_s30 + $0x10] sm:$0xff]  ;;  %v230_v5 = vld [vmem:[%s195_s30 + $0x28] sm:$0xff]  ;;  %s1145_s29 = scalar_lea.vmem [#allocation7], %s658_s20  ;;  %s684_s4 = sshll.u32 %s955_s15, 12 }
  0x40   : > { %v232_v6 = vld [vmem:[%s195_s30 + $0x38] sm:$0xff]  ;;  %v233_v7 = vpack.c.bf16 %v227_v4, %v225_v2  ;;  %v229_v8 = vld [vmem:[%s195_s30 + $0x20] sm:$0xff]  ;;  %v231_v9 = vld [vmem:[%s195_s30 + $0x30] sm:$0xff]  ;;  %s550_s21 = sshll.u32 %s1145_s29, 4  ;;  %s1210_s15 = scalar_lea.hbm %s1267_s3, %s684_s4  ;;  %s1212_s21 = int_to_ptr.vmem [resolvable:$true] %s550_s21 }
  0x41   : > { %264 = vxpose.xlu1.c.b16.start [1/2] (short) %v234_v3, 128  ;;  %v236_v10 = vpack.c.bf16 %v232_v6, %v230_v5  ;;  %v823_v11 = vld [vmem:[#allocation5 + $0x8] sm:$0xff]   ;;  %v235_v12 = vpack.c.bf16 %v231_v9, %v229_v8  ;;  %v824_v13 = vld [vmem:[#allocation5] sm:$0xff]   ;;  %s535_s7 = scalar_lea.sflag [#allocation4], %s1109_s11  ;;  %s879_s10 = scalar_lea.vmem %s1212_s21, 4096 }
  0x42   : > { %248 = vxpose.xlu0.c.b16.start [1/2] (short) %v233_v7, 128  ;;  %703 = vmatprep.subr.bf16.mxu0 %v823_v11  ;;  %v1141_v30 = vld [vmem:[%s1266_s2] ss:$0 sm:$0xff]  ;;  %p880_p1 = scmp.ne.s32.totalorder %s1212_s21, %s879_s10  ;;  %s971_s25 = smov [#allocation7]  }
  0x43   : > { %739 = vmatprep.subr.bf16.mxu1 %v823_v11  ;;  %704 = vmatpush3.bf16.msra.mxu0 %v823_v11  ;;  %s883_s8 = sshll.u32 %s971_s25, 4  ;;  %s884_s8 = int_to_ptr.vmem [resolvable:$false] %s883_s8 }
  0x44   : > { %741 = vmatpush3.bf16.msra.mxu1 %v823_v11  ;;  %705 = vmatprep.subr.bf16.mxu0 %v824_v13  ;;  %p881_p8 = pnand %p880_p1, %p1081_p13  ;;  %s885_s18 = scalar_lea.vmem %s884_s8, 8192 }
  0x45   : > { %265 = vxpose.xlu1.c.b16.end [2/2] (short) %v236_v10, 128  ;;  %740 = vmatprep.subr.bf16.mxu1 %v824_v13  ;;  %p886_p0 = scmp.lt.s32.totalorder %s1212_s21, %s884_s8  ;;  %p887_p2 = scmp.lt.s32.totalorder %s885_s18, %s879_s10 }
  0x46   : > { %249 = vxpose.xlu0.c.b16.end [2/2] (short) %v235_v12, 128  ;;  %p882_p10 = pneg %p881_p8 }
  0x47   : > { %706 = vmatpush3.bf16.msra.mxu0 %v824_v13  ;;  %p888_p3 = por %p887_p2, %p886_p0 }
  0x48   : > { %742 = vmatpush3.bf16.msra.mxu1 %v824_v13 }
  0x49   : > { %p889_p5 = pnand %p888_p3, %p882_p10 }
  0xa3   : > { %v272_v14 = vpop.trf.xlu1 }
  0xa4   : > { %v256_v15 = vpop.trf.xlu0  ;;  %723 = vmatprep.mubr.msk.bf16.mxu1 %vm292_vm0, %v272_v14 }
  0xa5   : > { %707 = vmatprep.mubr.msk.bf16.mxu0 %vm292_vm0, %v256_v15 }
  0xa7   : > { %v273_v16 = vpop.trf.xlu1 }
  0xa8   : > { %v257_v17 = vpop.trf.xlu0  ;;  %724 = vmatmul.mubr.msk.bf16.vlgmr.msra.gmra.mxu1 %vm292_vm0, %v273_v16 }
  0xa9   : > { %708 = vmatmul.mubr.msk.bf16.vlgmr.msra.gmra.mxu0 %vm292_vm0, %v257_v17 }
  0xab   : > { %v274_v18 = vpop.trf.xlu1 }
  0xac   : > { %v258_v19 = vpop.trf.xlu0  ;;  %727 = vmatprep.mubr.msk.bf16.mxu1 %vm292_vm0, %v274_v18 }
  0xad   : > { %711 = vmatprep.mubr.msk.bf16.mxu0 %vm292_vm0, %v258_v19 }
  0xaf   : > { %v275_v20 = vpop.trf.xlu1 }
  0xb0   : > { %v259_v21 = vpop.trf.xlu0  ;;  %728 = vmatmul.mubr.msk.bf16.gmra.mxu1 %vm292_vm0, %v275_v20 }
  0xb1   : > { %712 = vmatmul.mubr.msk.bf16.gmra.mxu0 %vm292_vm0, %v259_v21 }
  0xb3   : > { %v276_v22 = vpop.trf.xlu1 }
  0xb4   : > { %v260_v23 = vpop.trf.xlu0  ;;  %731 = vmatprep.mubr.msk.bf16.mxu1 %vm292_vm0, %v276_v22 }
  0xb5   : > { %715 = vmatprep.mubr.msk.bf16.mxu0 %vm292_vm0, %v260_v23 }
  0xb7   : > { %v277_v24 = vpop.trf.xlu1 }
  0xb8   : > { %v261_v25 = vpop.trf.xlu0  ;;  %732 = vmatmul.mubr.msk.bf16.gmra.mxu1 %vm292_vm0, %v277_v24 }
  0xb9   : > { %716 = vmatmul.mubr.msk.bf16.gmra.mxu0 %vm292_vm0, %v261_v25 }
  0xbb   : > { %v278_v26 = vpop.trf.xlu1 }
  0xbc   : > { %v262_v27 = vpop.trf.xlu0  ;;  %735 = vmatprep.mubr.msk.bf16.mxu1 %vm292_vm0, %v278_v26 }
  0xbd   : > { %719 = vmatprep.mubr.msk.bf16.mxu0 %vm292_vm0, %v262_v27 }
  0xbf   : > { %v279_v28 = vpop.trf.xlu1 }
  0xc0   : > { %v263_v29 = vpop.trf.xlu0  ;;  %736 = vmatmul.mubr.msk.bf16.gmra.mxu1 %vm292_vm0, %v279_v28 }
  0xc1   : > { %720 = vmatmul.mubr.msk.bf16.gmra.mxu0 %vm292_vm0, %v263_v29 }
 0x168   : > { %v725_v31 = vpop.f32.mrf.mxu1 }
 0x169   : > { %v709_v32 = vpop.f32.mrf.mxu0  ;;  %v448_v33 = vadd.f32 %v725_v31, %v1141_v30 }
 0x16a   : > { %v384_v34 = vadd.f32 %v709_v32, %v1141_v30  ;;  %v439_v35 = vpop.f32.mrf.mxu1 }
 0x16b   : > { %520 = vst [vmem:[%s1145_s29 + $0x90] sm:$0xff] %v448_v33  ;;  %v375_v36 = vpop.f32.mrf.mxu0  ;;  %v440_v37 = vadd.f32 %v1141_v30, %v439_v35 }
 0x16c   : > { %504 = vst [vmem:[%s1145_s29 + $0x10] sm:$0xff] %v384_v34  ;;  %v376_v38 = vadd.f32 %v1141_v30, %v375_v36  ;;  %v726_v39 = vpop.f32.mrf.mxu1 }
 0x16d   : > { %518 = vst [vmem:[%s1145_s29 + $0x80] sm:$0xff] %v440_v37  ;;  %v710_v40 = vpop.f32.mrf.mxu0  ;;  %v451_v41 = vadd.f32 %v726_v39, %v1141_v30 }
 0x16e   : > { %502 = vst [vmem:[%s1145_s29] sm:$0xff] %v376_v38  ;;  %v387_v42 = vadd.f32 %v710_v40, %v1141_v30  ;;  %v442_v43 = vpop.f32.mrf.mxu1 }
 0x16f   : > { %521 = vst [vmem:[%s1145_s29 + $0x98] sm:$0xff] %v451_v41  ;;  %v378_v44 = vpop.f32.mrf.mxu0  ;;  %v443_v45 = vadd.f32 %v1141_v30, %v442_v43 }
 0x170   : > { %505 = vst [vmem:[%s1145_s29 + $0x18] sm:$0xff] %v387_v42  ;;  %v379_v46 = vadd.f32 %v1141_v30, %v378_v44  ;;  %v729_v47 = vpop.f32.mrf.mxu1 }
 0x171   : > { %519 = vst [vmem:[%s1145_s29 + $0x88] sm:$0xff] %v443_v45  ;;  %v713_v48 = vpop.f32.mrf.mxu0  ;;  %v464_v49 = vadd.f32 %v729_v47, %v1141_v30 }
 0x172   : > { %503 = vst [vmem:[%s1145_s29 + $0x8] sm:$0xff] %v379_v46  ;;  %v400_v50 = vadd.f32 %v713_v48, %v1141_v30  ;;  %v455_v51 = vpop.f32.mrf.mxu1 }
 0x173   : > { %524 = vst [vmem:[%s1145_s29 + $0xb0] sm:$0xff] %v464_v49  ;;  %v391_v52 = vpop.f32.mrf.mxu0  ;;  %v456_v53 = vadd.f32 %v1141_v30, %v455_v51 }
 0x174   : > { %508 = vst [vmem:[%s1145_s29 + $0x30] sm:$0xff] %v400_v50  ;;  %v392_v54 = vadd.f32 %v1141_v30, %v391_v52  ;;  %v730_v55 = vpop.f32.mrf.mxu1 }
 0x175   : > { %522 = vst [vmem:[%s1145_s29 + $0xa0] sm:$0xff] %v456_v53  ;;  %v714_v56 = vpop.f32.mrf.mxu0  ;;  %v467_v57 = vadd.f32 %v730_v55, %v1141_v30 }
 0x176   : > { %506 = vst [vmem:[%s1145_s29 + $0x20] sm:$0xff] %v392_v54  ;;  %v403_v58 = vadd.f32 %v714_v56, %v1141_v30  ;;  %v458_v59 = vpop.f32.mrf.mxu1 }
 0x177   : > { %525 = vst [vmem:[%s1145_s29 + $0xb8] sm:$0xff] %v467_v57  ;;  %v394_v60 = vpop.f32.mrf.mxu0  ;;  %v459_v61 = vadd.f32 %v1141_v30, %v458_v59 }
 0x178   : > { %509 = vst [vmem:[%s1145_s29 + $0x38] sm:$0xff] %v403_v58  ;;  %v395_v62 = vadd.f32 %v1141_v30, %v394_v60  ;;  %v733_v63 = vpop.f32.mrf.mxu1 }
 0x179   : > { %523 = vst [vmem:[%s1145_s29 + $0xa8] sm:$0xff] %v459_v61  ;;  %v717_v0 = vpop.f32.mrf.mxu0  ;;  %v480_v1 = vadd.f32 %v733_v63, %v1141_v30 }
 0x17a   : > { %507 = vst [vmem:[%s1145_s29 + $0x28] sm:$0xff] %v395_v62  ;;  %v416_v2 = vadd.f32 %v717_v0, %v1141_v30  ;;  %v471_v3 = vpop.f32.mrf.mxu1 }
 0x17b   : > { %528 = vst [vmem:[%s1145_s29 + $0xd0] sm:$0xff] %v480_v1  ;;  %v407_v4 = vpop.f32.mrf.mxu0  ;;  %v472_v5 = vadd.f32 %v1141_v30, %v471_v3 }
 0x17c   : > { %512 = vst [vmem:[%s1145_s29 + $0x50] sm:$0xff] %v416_v2  ;;  %v408_v6 = vadd.f32 %v1141_v30, %v407_v4  ;;  %v734_v7 = vpop.f32.mrf.mxu1 }
 0x17d   : > { %526 = vst [vmem:[%s1145_s29 + $0xc0] sm:$0xff] %v472_v5  ;;  %v718_v8 = vpop.f32.mrf.mxu0  ;;  %v483_v9 = vadd.f32 %v734_v7, %v1141_v30 }
 0x17e   : > { %510 = vst [vmem:[%s1145_s29 + $0x40] sm:$0xff] %v408_v6  ;;  %v419_v10 = vadd.f32 %v718_v8, %v1141_v30  ;;  %v474_v11 = vpop.f32.mrf.mxu1 }
 0x17f   : > { %529 = vst [vmem:[%s1145_s29 + $0xd8] sm:$0xff] %v483_v9  ;;  %v410_v12 = vpop.f32.mrf.mxu0  ;;  %v475_v13 = vadd.f32 %v1141_v30, %v474_v11 }
 0x180   : > { %513 = vst [vmem:[%s1145_s29 + $0x58] sm:$0xff] %v419_v10  ;;  %v411_v14 = vadd.f32 %v1141_v30, %v410_v12  ;;  %v737_v15 = vpop.f32.mrf.mxu1 }
 0x181   : > { %527 = vst [vmem:[%s1145_s29 + $0xc8] sm:$0xff] %v475_v13  ;;  %v721_v16 = vpop.f32.mrf.mxu0  ;;  %v496_v17 = vadd.f32 %v737_v15, %v1141_v30 }
 0x182   : > { %511 = vst [vmem:[%s1145_s29 + $0x48] sm:$0xff] %v411_v14  ;;  %v432_v18 = vadd.f32 %v721_v16, %v1141_v30  ;;  %v487_v19 = vpop.f32.mrf.mxu1 }
 0x183   : > { %532 = vst [vmem:[%s1145_s29 + $0xf0] sm:$0xff] %v496_v17  ;;  %v423_v20 = vpop.f32.mrf.mxu0  ;;  %v488_v21 = vadd.f32 %v1141_v30, %v487_v19 }
 0x184   : > { %516 = vst [vmem:[%s1145_s29 + $0x70] sm:$0xff] %v432_v18  ;;  %v424_v22 = vadd.f32 %v1141_v30, %v423_v20  ;;  %v738_v23 = vpop.f32.mrf.mxu1 }
 0x185   : > { %530 = vst [vmem:[%s1145_s29 + $0xe0] sm:$0xff] %v488_v21  ;;  %v722_v24 = vpop.f32.mrf.mxu0  ;;  %v499_v25 = vadd.f32 %v738_v23, %v1141_v30 }
 0x186   : > { %514 = vst [vmem:[%s1145_s29 + $0x60] sm:$0xff] %v424_v22  ;;  %v435_v26 = vadd.f32 %v722_v24, %v1141_v30  ;;  %v490_v27 = vpop.f32.mrf.mxu1 }
 0x187   : > { %533 = vst [vmem:[%s1145_s29 + $0xf8] sm:$0xff] %v499_v25  ;;  %v426_v28 = vpop.f32.mrf.mxu0  ;;  %v491_v29 = vadd.f32 %v1141_v30, %v490_v27 }
 0x188   : > { %517 = vst [vmem:[%s1145_s29 + $0x78] sm:$0xff] %v435_v26  ;;  %v427_v31 = vadd.f32 %v1141_v30, %v426_v28 }
 0x189   : > { %531 = vst [vmem:[%s1145_s29 + $0xe8] sm:$0xff] %v491_v29 }
 0x18a   : > { %515 = vst [vmem:[%s1145_s29 + $0x68] sm:$0xff] %v427_v31 }
 0x18b   : > { %892 = shalt.err (!%p889_p5)
}
 0x18c   : > { %s893_s26 = scalar_lea.hbm %s1210_s15, 4096  ;;  %s897_s20 = scalar_lea.hbm %s1267_s3, 8192 }
 0x18d   : > { %p894_p7 = scmp.ne.s32.totalorder %s1210_s15, %s893_s26  ;;  %p898_p9 = scmp.lt.s32.totalorder %s1210_s15, %s1267_s3 }
 0x18e   : > { %p899_p11 = scmp.lt.s32.totalorder %s897_s20, %s893_s26 }
 0x18f   : > { %p895_p6 = pnand %p894_p7, %p1081_p13 }
 0x190   : > { %p900_p12 = por %p899_p11, %p898_p9 }
 0x191   : > { %p896_p4 = pneg %p895_p6 }
 0x193   : > { %p901_p1 = pnand %p900_p12, %p896_p4 }
 0x195   : > { %904 = shalt.err (!%p901_p1)
}
 0x196   : > { %s972_s29 = smov 128   ;;  %s973_s4 = smov 8  }
 0x197   : > { %749 = dma.vmem_to_hbm [thread:$0]  (%p1081_p13), %s1212_s21, 4096, %s1210_s15, %s535_s7, %s972_s29, %s972_s29, %s973_s4  }
 0x198 PF: > { %s565_s5 = sand.u32 1, %s943_s12   ;;  %p1279_p8 = scmp.ne.s32.totalorder %s1272_s23, 0 }
 0x199   : > { %p1280_p10 = scmp.ge.s32.totalorder %s963_s17, 2  ;;  %s566_s6 = scalar_lea.sflag [#allocation4], %s565_s5 }
 0x19b   : > { %p760_p0 = pnand %p1280_p10, %p1279_p8 }
 0x19d   : > { %p761_p2 = pneg %p760_p0 }
 0x19f   : > { %938 = dma.done.wait (%p761_p2), %s566_s6, 4096  }
 0x1a0   : > { %940 = vsyncadd (%p761_p2), %s566_s6, 4294963200  ;;  %s20_s17 = sadd.s32 1, %s963_s17   ;;  %s1281_s12 = smov %s947_s13 }
 0x1a1   : > { %p17_p3 = scmp.ge.s32.totalorder %s20_s17, 4   ;;  %s1282_s13 = smov %s951_s14 }
 0x1a2   : > { %s1283_s14 = smov %s1090_s19  ;;  %s1284_s15 = smov %s959_s16 }
 0x1a3   : > { %s1285_s16 = smov %s1287_s28  ;;  %19 = sbr.rel (!%p17_p3) target bundleno = 7 (0x7), region = 81 }
 0x1a8   :  { %571 = vsyncpa [#allocation3], 1 }
 0x1a9   :  { %573 = vsyncpa [#allocation3 + $0x1], 1 }
 0x1aa   :  { %574 = vsyncpa [#allocation6], 1 }
 0x1ab   :  { %575 = vsyncpa [#allocation4], 1 }
 0x1ac   :  { %577 = vsyncpa [#allocation4 + $0x1], 1 }

</bundles_post_ra>
